<compile_context>
chip_gen: v7x
topology: tpu7x:2x2x1
jax: 0.10.0
libtpu: 0.0.40
codegen_flags: <defaults>
</compile_context>

<pallas_src>
import functools
import math

import jax
import jax.numpy as jnp
from jax import lax
from jax.experimental import pallas as pl
from jax.experimental.pallas import tpu as pltpu


WINDOW_SIZE = 11
SIGMA = 1.5
C1 = 0.01 ** 2
C2 = 0.03 ** 2

_BAND_BLOCK = 256  # lane-aligned block width for band-blocked matmuls


def gaussian_1d(window_size: int, sigma: float) -> jnp.ndarray:
    vals = jnp.asarray(
        [math.exp(-((x - window_size // 2) ** 2) / float(2 * sigma ** 2))
         for x in range(window_size)],
        dtype=jnp.float32,
    )
    return vals / jnp.sum(vals)


def _band_right(n: int, g: jnp.ndarray, pad: int) -> jnp.ndarray:
    """Banded matrix B with B[k, i] = g[k - i + pad] (0 outside the band).

    For a row vector x (length n), x @ B is the 1-D cross-correlation of x with
    g under zero padding `pad` (F.conv1d / F.conv2d semantics); the padding is
    folded into the matrix so no explicit jnp.pad is needed."""
    k = g.shape[0]
    i = jnp.arange(n)[:, None]
    j = jnp.arange(n)[None, :]
    d = i - j + pad
    valid = (d >= 0) & (d < k)
    return jnp.where(valid, g[jnp.clip(d, 0, k - 1)], 0.0).astype(jnp.float32)


def _vmem_capacity_bytes() -> int:
    try:
        return int(pltpu.get_tpu_info().vmem_capacity_bytes)
    except Exception:
        return 64 * 1024 * 1024  # conservative fallback (v7x per-TC VMEM)


def _plane_tile(P: int, H: int, W: int, in_bytes: int, cdt_bytes: int,
                budget_bytes: int) -> int:
    """Largest plane-tile T fitting the VMEM budget (with >= 2 grid steps).

    Per-plane estimate: double-buffered inputs (2 arrays x 2 bufs x in_bytes),
    ~4 compute-dtype copies (casts / current map / cast transposed row) and
    ~11 f32 planes (row, transposed row, col, the 5 conv outputs, elementwise
    temporaries).  The Bw/Bh double buffers are charged as a constant."""
    const = 2 * 2 * (W * W + H * H) * 4
    per_plane = H * W * (4 * in_bytes + 4 * cdt_bytes + 11 * 4)
    avail = max(budget_bytes - const, per_plane)
    t = max(1, min(P, avail // per_plane))
    if P >= 2:
        t = min(t, -(-P // 2))  # keep G >= 2: dual-TC "parallel" sharding (v7x)
    return int(t)


def _banded_right_matmul(x, bmat_ref):
    """x @ B on the MXU, exploiting that B (n, n) is banded (halfwidth 5).

    For large, 256-aligned n, each 256-wide output block only contracts its own
    + neighbouring diagonal blocks (<= 768 MACs/output instead of n), cutting
    MXU work by ~n/768.  The assembly concat is the (lane-dense, full-vreg)
    materialization of the result we would need anyway.  Small or unaligned n
    falls back to a single dense matmul."""
    n = bmat_ref.shape[0]
    if n < 3 * _BAND_BLOCK or n % _BAND_BLOCK:
        return jnp.dot(x, bmat_ref[...].astype(x.dtype),
                       preferred_element_type=jnp.float32)
    pieces = []
    for j in range(n // _BAND_BLOCK):
        c0, c1 = j * _BAND_BLOCK, (j + 1) * _BAND_BLOCK
        lo = max(0, c0 - _BAND_BLOCK)
        hi = min(n, c1 + _BAND_BLOCK)
        pieces.append(jnp.dot(
            x[:, lo:hi],
            bmat_ref[lo:hi, c0:c1].astype(x.dtype),
            preferred_element_type=jnp.float32))
    return jnp.concatenate(pieces, axis=1)


def _ssim_kernel(x1_ref, x2_ref, bw_ref, bh_ref, out_ref, *,
                 compute_dtype, n_valid_planes, need_mask):
    """x1_ref/x2_ref: (T, H, W) block of (n, c) planes (native dtype).
    bw_ref: (W, W) banded Gaussian (W pass).  bh_ref: (H, H) banded Gaussian
    (H pass, applied to the transposed planes).  out_ref: (1, 8, 128)
    lane-dense partial-sum tile for this grid step."""
    T, H, W = x1_ref.shape
    cdt = compute_dtype

    x1 = x1_ref[...].astype(cdt)
    x2 = x2_ref[...].astype(cdt)

    def sep_conv(m):
        # m: (T, H, W) in compute dtype.  Returns the Gaussian-filtered planes
        # in TRANSPOSED (T, W, H) layout, f32.  The SSIM math is elementwise
        # plus a global sum, so we never transpose back.
        r = _banded_right_matmul(m.reshape(T * H, W), bw_ref)        # W pass
        rt = jnp.swapaxes(r.reshape(T, H, W), 1, 2)                  # XLU
        c = _banded_right_matmul(rt.reshape(T * W, H).astype(cdt), bh_ref)  # H pass
        return c.reshape(T, W, H)

    mu1 = sep_conv(x1)
    mu2 = sep_conv(x2)
    e11 = sep_conv(x1 * x1)
    e22 = sep_conv(x2 * x2)
    e12 = sep_conv(x1 * x2)

    mu1_sq = mu1 * mu1
    mu2_sq = mu2 * mu2
    mu1_mu2 = mu1 * mu2
    sigma1_sq = e11 - mu1_sq
    sigma2_sq = e22 - mu2_sq
    sigma12 = e12 - mu1_mu2

    ssim_map = ((2.0 * mu1_mu2 + C1) * (2.0 * sigma12 + C2)) / (
        (mu1_sq + mu2_sq + C1) * (sigma1_sq + sigma2_sq + C2)
    )

    if need_mask:
        # Zero out the zero-padded planes appended so that P divides into T.
        plane = (pl.program_id(0) * T
                 + lax.broadcasted_iota(jnp.int32, (T, 1, 1), 0))
        ssim_map = jnp.where(plane < n_valid_planes, ssim_map, 0.0)

    # Per-block partial sum splatted across a lane-dense tile (unmasked
    # full-vreg store; final sum/mean happens in the wrapper).
    out_ref[...] = jnp.full(out_ref.shape, jnp.sum(ssim_map), dtype=jnp.float32)


def ssim_pallas(img1: jnp.ndarray, img2: jnp.ndarray,
                window_size: int = WINDOW_SIZE) -> jnp.ndarray:
    """SSIM.forward(img1, img2) with size_average=True. img1/img2: (N,C,H,W)."""
    N, C, H, W = img1.shape
    P = N * C
    pad = window_size // 2
    g = gaussian_1d(window_size, SIGMA)

    bw = _band_right(W, g, pad)  # (W, W): right-multiply == conv along W
    bh = _band_right(H, g, pad)  # (H, H): right-multiply of transposed planes
                                 #         == conv along H (g is symmetric)

    # Native-dtype DMA: bf16/f16 inputs stay narrow over HBM and feed the MXU
    # as bf16 (f32 accumulation); everything else runs the matmuls in f32.
    if img1.dtype == jnp.bfloat16 or img1.dtype == jnp.float16:
        cdt = jnp.bfloat16
    else:
        cdt = jnp.float32
        if img1.dtype != jnp.float32:
            img1 = img1.astype(jnp.float32)
            img2 = img2.astype(jnp.float32)

    # Metadata-only reshape to planes-major layout (no pad, no stack copy).
    x1 = img1.reshape(P, H, W)
    x2 = img2.reshape(P, H, W)

    cap = _vmem_capacity_bytes()
    in_bytes = jnp.dtype(x1.dtype).itemsize
    cdt_bytes = jnp.dtype(cdt).itemsize
    T = _plane_tile(P, H, W, in_bytes, cdt_bytes, budget_bytes=cap // 2)
    G = -(-P // T)
    P_pad = G * T
    need_mask = P_pad != P
    if need_mask:
        padw = ((0, P_pad - P), (0, 0), (0, 0))
        x1 = jnp.pad(x1, padw)
        x2 = jnp.pad(x2, padw)

    kernel = functools.partial(
        _ssim_kernel, compute_dtype=cdt, n_valid_planes=P, need_mask=need_mask)

    partial_sums = pl.pallas_call(
        kernel,
        out_shape=jax.ShapeDtypeStruct((G, 8, 128), jnp.float32),
        grid=(G,),
        in_specs=[
            pl.BlockSpec((T, H, W), lambda i: (i, 0, 0)),
            pl.BlockSpec((T, H, W), lambda i: (i, 0, 0)),
            pl.BlockSpec((W, W), lambda i: (0, 0)),
            pl.BlockSpec((H, H), lambda i: (0, 0)),
        ],
        out_specs=pl.BlockSpec((1, 8, 128), lambda i: (i, 0, 0)),
        compiler_params=pltpu.CompilerParams(
            dimension_semantics=("parallel",),
            # Above the scoped defaults (16 MiB v5e / 32 MiB v6e,v7x), below
            # physical capacity with headroom.
            vmem_limit_bytes=min((cap * 3) // 4, 112 * 1024 * 1024)),
    )(x1, x2, bw, bh)

    total = jnp.sum(partial_sums[:, 0, 0])
    return total / jnp.float32(N * C * H * W)


def ssim_reference(img1, img2, window_size: int = WINDOW_SIZE):
    """Pure-JAX reference mirroring the PyTorch _ssim (grouped conv2d)."""
    N, C, H, W = img1.shape
    g = gaussian_1d(window_size, SIGMA)
    w2d = jnp.outer(g, g)
    window = jnp.broadcast_to(w2d[None, None], (C, 1, window_size, window_size))
    pad = window_size // 2

    def conv(x):
        return jax.lax.conv_general_dilated(
            x, window, window_strides=(1, 1),
            padding=[(pad, pad), (pad, pad)],
            feature_group_count=C,
            dimension_numbers=("NCHW", "OIHW", "NCHW"),
            precision=jax.lax.Precision.HIGHEST)

    mu1 = conv(img1)
    mu2 = conv(img2)
    mu1_sq, mu2_sq, mu1_mu2 = mu1 * mu1, mu2 * mu2, mu1 * mu2
    sigma1_sq = conv(img1 * img1) - mu1_sq
    sigma2_sq = conv(img2 * img2) - mu2_sq
    sigma12 = conv(img1 * img2) - mu1_mu2
    ssim_map = ((2 * mu1_mu2 + C1) * (2 * sigma12 + C2)) / (
        (mu1_sq + mu2_sq + C1) * (sigma1_sq + sigma2_sq + C2))
    return ssim_map.mean()


if __name__ == "__main__":
    key = jax.random.PRNGKey(0)
    k1, k2 = jax.random.split(key)
    img1 = jax.random.uniform(k1, (2, 4, 16, 16), dtype=jnp.float32)
    img2 = jax.random.uniform(k2, (2, 4, 16, 16), dtype=jnp.float32)

    out = ssim_pallas(img1, img2)
    out = jax.block_until_ready(out)

    ref = ssim_reference(img1, img2)
    # MXU matmul rounding can differ from the Precision.HIGHEST conv reference.
    assert abs(float(out) - float(ref)) < 1e-3 + 1e-2 * abs(float(ref)), (
        float(out), float(ref))

    print("KERNEL_OK")
</pallas_src>

<mosaic_0001>
module attributes {stable_mosaic.version = 11 : i64} {
  func.func @_ssim_kernel(%arg0: i32, %arg1: memref<4x16x16xf32, #tpu.memory_space<vmem>>, %arg2: memref<4x16x16xf32, #tpu.memory_space<vmem>>, %arg3: memref<16x16xf32, #tpu.memory_space<vmem>>, %arg4: memref<16x16xf32, #tpu.memory_space<vmem>>, %arg5: memref<1x8x128xf32, #tpu.memory_space<vmem>>) attributes {dimension_semantics = [#tpu.dimension_semantics<parallel>], iteration_bounds = array<i64: 2>, scalar_prefetch = 0 : i64, scratch_operands = 0 : i64, tpu.core_type = #tpu.core_type<tc>, window_params = [{transform_indices = @transform_0, window_bounds = array<i64: 4, 16, 16>}, {transform_indices = @transform_1, window_bounds = array<i64: 4, 16, 16>}, {pipeline_mode = #tpu.pipeline_mode<synchronous>, transform_indices = @transform_2, window_bounds = array<i64: 16, 16>}, {pipeline_mode = #tpu.pipeline_mode<synchronous>, transform_indices = @transform_3, window_bounds = array<i64: 16, 16>}, {transform_indices = @transform_4, window_bounds = array<i64: 1, 8, 128>}]} {
    %c0 = arith.constant 0 : index
    %c0_0 = arith.constant 0 : index
    %c0_1 = arith.constant 0 : index
    %0 = vector.load %arg1[%c0, %c0_0, %c0_1] : memref<4x16x16xf32, #tpu.memory_space<vmem>>, vector<4x16x16xf32>
    %c0_2 = arith.constant 0 : index
    %c0_3 = arith.constant 0 : index
    %c0_4 = arith.constant 0 : index
    %1 = vector.load %arg2[%c0_2, %c0_3, %c0_4] : memref<4x16x16xf32, #tpu.memory_space<vmem>>, vector<4x16x16xf32>
    %2 = vector.shape_cast %0 : vector<4x16x16xf32> to vector<64x16xf32>
    %c0_5 = arith.constant 0 : index
    %c0_6 = arith.constant 0 : index
    %3 = vector.load %arg3[%c0_5, %c0_6] : memref<16x16xf32, #tpu.memory_space<vmem>>, vector<16x16xf32>
    %cst = arith.constant dense<0.000000e+00> : vector<64x16xf32>
    %4 = tpu.matmul %2, %3, %cst {dimension_numbers = #tpu.dot_dimension_numbers<[1], [0], [0], [1], [0, 0, 1, 1], [], []>} : vector<64x16xf32>, vector<16x16xf32>, vector<64x16xf32> -> vector<64x16xf32>
    %5 = vector.shape_cast %4 : vector<64x16xf32> to vector<4x16x16xf32>
    %6 = tpu.transpose %5, [0, 2, 1] : vector<4x16x16xf32> -> vector<4x16x16xf32>
    %7 = vector.shape_cast %6 : vector<4x16x16xf32> to vector<64x16xf32>
    %c0_7 = arith.constant 0 : index
    %c0_8 = arith.constant 0 : index
    %8 = vector.load %arg4[%c0_7, %c0_8] : memref<16x16xf32, #tpu.memory_space<vmem>>, vector<16x16xf32>
    %cst_9 = arith.constant dense<0.000000e+00> : vector<64x16xf32>
    %9 = tpu.matmul %7, %8, %cst_9 {dimension_numbers = #tpu.dot_dimension_numbers<[1], [0], [0], [1], [0, 0, 1, 1], [], []>} : vector<64x16xf32>, vector<16x16xf32>, vector<64x16xf32> -> vector<64x16xf32>
    %10 = vector.shape_cast %9 : vector<64x16xf32> to vector<4x16x16xf32>
    %11 = vector.shape_cast %1 : vector<4x16x16xf32> to vector<64x16xf32>
    %c0_10 = arith.constant 0 : index
    %c0_11 = arith.constant 0 : index
    %12 = vector.load %arg3[%c0_10, %c0_11] : memref<16x16xf32, #tpu.memory_space<vmem>>, vector<16x16xf32>
    %cst_12 = arith.constant dense<0.000000e+00> : vector<64x16xf32>
    %13 = tpu.matmul %11, %12, %cst_12 {dimension_numbers = #tpu.dot_dimension_numbers<[1], [0], [0], [1], [0, 0, 1, 1], [], []>} : vector<64x16xf32>, vector<16x16xf32>, vector<64x16xf32> -> vector<64x16xf32>
    %14 = vector.shape_cast %13 : vector<64x16xf32> to vector<4x16x16xf32>
    %15 = tpu.transpose %14, [0, 2, 1] : vector<4x16x16xf32> -> vector<4x16x16xf32>
    %16 = vector.shape_cast %15 : vector<4x16x16xf32> to vector<64x16xf32>
    %c0_13 = arith.constant 0 : index
    %c0_14 = arith.constant 0 : index
    %17 = vector.load %arg4[%c0_13, %c0_14] : memref<16x16xf32, #tpu.memory_space<vmem>>, vector<16x16xf32>
    %cst_15 = arith.constant dense<0.000000e+00> : vector<64x16xf32>
    %18 = tpu.matmul %16, %17, %cst_15 {dimension_numbers = #tpu.dot_dimension_numbers<[1], [0], [0], [1], [0, 0, 1, 1], [], []>} : vector<64x16xf32>, vector<16x16xf32>, vector<64x16xf32> -> vector<64x16xf32>
    %19 = vector.shape_cast %18 : vector<64x16xf32> to vector<4x16x16xf32>
    %20 = arith.mulf %0, %0 : vector<4x16x16xf32>
    %21 = vector.shape_cast %20 : vector<4x16x16xf32> to vector<64x16xf32>
    %c0_16 = arith.constant 0 : index
    %c0_17 = arith.constant 0 : index
    %22 = vector.load %arg3[%c0_16, %c0_17] : memref<16x16xf32, #tpu.memory_space<vmem>>, vector<16x16xf32>
    %cst_18 = arith.constant dense<0.000000e+00> : vector<64x16xf32>
    %23 = tpu.matmul %21, %22, %cst_18 {dimension_numbers = #tpu.dot_dimension_numbers<[1], [0], [0], [1], [0, 0, 1, 1], [], []>} : vector<64x16xf32>, vector<16x16xf32>, vector<64x16xf32> -> vector<64x16xf32>
    %24 = vector.shape_cast %23 : vector<64x16xf32> to vector<4x16x16xf32>
    %25 = tpu.transpose %24, [0, 2, 1] : vector<4x16x16xf32> -> vector<4x16x16xf32>
    %26 = vector.shape_cast %25 : vector<4x16x16xf32> to vector<64x16xf32>
    %c0_19 = arith.constant 0 : index
    %c0_20 = arith.constant 0 : index
    %27 = vector.load %arg4[%c0_19, %c0_20] : memref<16x16xf32, #tpu.memory_space<vmem>>, vector<16x16xf32>
    %cst_21 = arith.constant dense<0.000000e+00> : vector<64x16xf32>
    %28 = tpu.matmul %26, %27, %cst_21 {dimension_numbers = #tpu.dot_dimension_numbers<[1], [0], [0], [1], [0, 0, 1, 1], [], []>} : vector<64x16xf32>, vector<16x16xf32>, vector<64x16xf32> -> vector<64x16xf32>
    %29 = vector.shape_cast %28 : vector<64x16xf32> to vector<4x16x16xf32>
    %30 = arith.mulf %1, %1 : vector<4x16x16xf32>
    %31 = vector.shape_cast %30 : vector<4x16x16xf32> to vector<64x16xf32>
    %c0_22 = arith.constant 0 : index
    %c0_23 = arith.constant 0 : index
    %32 = vector.load %arg3[%c0_22, %c0_23] : memref<16x16xf32, #tpu.memory_space<vmem>>, vector<16x16xf32>
    %cst_24 = arith.constant dense<0.000000e+00> : vector<64x16xf32>
    %33 = tpu.matmul %31, %32, %cst_24 {dimension_numbers = #tpu.dot_dimension_numbers<[1], [0], [0], [1], [0, 0, 1, 1], [], []>} : vector<64x16xf32>, vector<16x16xf32>, vector<64x16xf32> -> vector<64x16xf32>
    %34 = vector.shape_cast %33 : vector<64x16xf32> to vector<4x16x16xf32>
    %35 = tpu.transpose %34, [0, 2, 1] : vector<4x16x16xf32> -> vector<4x16x16xf32>
    %36 = vector.shape_cast %35 : vector<4x16x16xf32> to vector<64x16xf32>
    %c0_25 = arith.constant 0 : index
    %c0_26 = arith.constant 0 : index
    %37 = vector.load %arg4[%c0_25, %c0_26] : memref<16x16xf32, #tpu.memory_space<vmem>>, vector<16x16xf32>
    %cst_27 = arith.constant dense<0.000000e+00> : vector<64x16xf32>
    %38 = tpu.matmul %36, %37, %cst_27 {dimension_numbers = #tpu.dot_dimension_numbers<[1], [0], [0], [1], [0, 0, 1, 1], [], []>} : vector<64x16xf32>, vector<16x16xf32>, vector<64x16xf32> -> vector<64x16xf32>
    %39 = vector.shape_cast %38 : vector<64x16xf32> to vector<4x16x16xf32>
    %40 = arith.mulf %0, %1 : vector<4x16x16xf32>
    %41 = vector.shape_cast %40 : vector<4x16x16xf32> to vector<64x16xf32>
    %c0_28 = arith.constant 0 : index
    %c0_29 = arith.constant 0 : index
    %42 = vector.load %arg3[%c0_28, %c0_29] : memref<16x16xf32, #tpu.memory_space<vmem>>, vector<16x16xf32>
    %cst_30 = arith.constant dense<0.000000e+00> : vector<64x16xf32>
    %43 = tpu.matmul %41, %42, %cst_30 {dimension_numbers = #tpu.dot_dimension_numbers<[1], [0], [0], [1], [0, 0, 1, 1], [], []>} : vector<64x16xf32>, vector<16x16xf32>, vector<64x16xf32> -> vector<64x16xf32>
    %44 = vector.shape_cast %43 : vector<64x16xf32> to vector<4x16x16xf32>
    %45 = tpu.transpose %44, [0, 2, 1] : vector<4x16x16xf32> -> vector<4x16x16xf32>
    %46 = vector.shape_cast %45 : vector<4x16x16xf32> to vector<64x16xf32>
    %c0_31 = arith.constant 0 : index
    %c0_32 = arith.constant 0 : index
    %47 = vector.load %arg4[%c0_31, %c0_32] : memref<16x16xf32, #tpu.memory_space<vmem>>, vector<16x16xf32>
    %cst_33 = arith.constant dense<0.000000e+00> : vector<64x16xf32>
    %48 = tpu.matmul %46, %47, %cst_33 {dimension_numbers = #tpu.dot_dimension_numbers<[1], [0], [0], [1], [0, 0, 1, 1], [], []>} : vector<64x16xf32>, vector<16x16xf32>, vector<64x16xf32> -> vector<64x16xf32>
    %49 = vector.shape_cast %48 : vector<64x16xf32> to vector<4x16x16xf32>
    %50 = arith.mulf %10, %10 : vector<4x16x16xf32>
    %51 = arith.mulf %19, %19 : vector<4x16x16xf32>
    %52 = arith.mulf %10, %19 : vector<4x16x16xf32>
    %53 = arith.subf %29, %50 : vector<4x16x16xf32>
    %54 = arith.subf %39, %51 : vector<4x16x16xf32>
    %55 = arith.subf %49, %52 : vector<4x16x16xf32>
    %cst_34 = arith.constant 2.000000e+00 : f32
    %56 = vector.broadcast %cst_34 : f32 to vector<4x16x16xf32>
    %57 = arith.mulf %56, %52 : vector<4x16x16xf32>
    %cst_35 = arith.constant 9.99999974E-5 : f32
    %58 = vector.broadcast %cst_35 : f32 to vector<4x16x16xf32>
    %59 = arith.addf %57, %58 : vector<4x16x16xf32>
    %cst_36 = arith.constant 2.000000e+00 : f32
    %60 = vector.broadcast %cst_36 : f32 to vector<4x16x16xf32>
    %61 = arith.mulf %60, %55 : vector<4x16x16xf32>
    %cst_37 = arith.constant 8.99999984E-4 : f32
    %62 = vector.broadcast %cst_37 : f32 to vector<4x16x16xf32>
    %63 = arith.addf %61, %62 : vector<4x16x16xf32>
    %64 = arith.mulf %59, %63 : vector<4x16x16xf32>
    %65 = arith.addf %50, %51 : vector<4x16x16xf32>
    %cst_38 = arith.constant 9.99999974E-5 : f32
    %66 = vector.broadcast %cst_38 : f32 to vector<4x16x16xf32>
    %67 = arith.addf %65, %66 : vector<4x16x16xf32>
    %68 = arith.addf %53, %54 : vector<4x16x16xf32>
    %cst_39 = arith.constant 8.99999984E-4 : f32
    %69 = vector.broadcast %cst_39 : f32 to vector<4x16x16xf32>
    %70 = arith.addf %68, %69 : vector<4x16x16xf32>
    %71 = arith.mulf %67, %70 : vector<4x16x16xf32>
    %72 = arith.divf %64, %71 : vector<4x16x16xf32>
    %73 = vector.shape_cast %72 : vector<4x16x16xf32> to vector<1x4x16x16xf32>
    %cst_40 = arith.constant dense<0.000000e+00> : vector<1xf32>
    %74 = vector.multi_reduction <add>, %73, %cst_40 [1, 2, 3] : vector<1x4x16x16xf32> to vector<1xf32>
    %75 = vector.shape_cast %74 : vector<1xf32> to vector<1x1x1x1xf32>
    %76 = vector.extract %75[0, 0, 0, 0] : f32 from vector<1x1x1x1xf32>
    %77 = vector.broadcast %76 : f32 to vector<1x8x128xf32>
    %c0_41 = arith.constant 0 : index
    %c0_42 = arith.constant 0 : index
    %c0_43 = arith.constant 0 : index
    %78 = vector.load %arg5[%c0_41, %c0_42, %c0_43] : memref<1x8x128xf32, #tpu.memory_space<vmem>>, vector<1x8x128xf32>
    tpu.vector_store %arg5[%c0_41, %c0_42, %c0_43], %77 {strides = array<i32>} : memref<1x8x128xf32, #tpu.memory_space<vmem>>, vector<1x8x128xf32>,
    return
  }
  func.func @transform_0(%arg0: i32) -> (i32, i32, i32) {
    %c0_i32 = arith.constant 0 : i32
    %c0_i32_0 = arith.constant 0 : i32
    %c0_i32_1 = arith.constant 0 : i32
    return %arg0, %c0_i32, %c0_i32_0 : i32, i32, i32
  }
  func.func @transform_1(%arg0: i32) -> (i32, i32, i32) {
    %c0_i32 = arith.constant 0 : i32
    %c0_i32_0 = arith.constant 0 : i32
    %c0_i32_1 = arith.constant 0 : i32
    return %arg0, %c0_i32, %c0_i32_0 : i32, i32, i32
  }
  func.func @transform_2(%arg0: i32) -> (i32, i32) {
    %c0_i32 = arith.constant 0 : i32
    %c0_i32_0 = arith.constant 0 : i32
    %c0_i32_1 = arith.constant 0 : i32
    return %c0_i32, %c0_i32_0 : i32, i32
  }
  func.func @transform_3(%arg0: i32) -> (i32, i32) {
    %c0_i32 = arith.constant 0 : i32
    %c0_i32_0 = arith.constant 0 : i32
    %c0_i32_1 = arith.constant 0 : i32
    return %c0_i32, %c0_i32_0 : i32, i32
  }
  func.func @transform_4(%arg0: i32) -> (i32, i32, i32) {
    %c0_i32 = arith.constant 0 : i32
    %c0_i32_0 = arith.constant 0 : i32
    %c0_i32_1 = arith.constant 0 : i32
    return %arg0, %c0_i32, %c0_i32_0 : i32, i32, i32
  }
}

</mosaic_0001>

<bundles_post_ra>
// kernel: tpu_custom_call.1
= control target key start
LH: loop header
LB: loop body
LE: loop exit
PB: predicated region body
PF: predicated region fallthrough
CT: control target
= control target key end

     0   :  { %s3817_s0 = inlined_call_operand.hbm [shape: f32[8,16,16], index: 0, kind: input, shape index: {}]   ;;  %s3818_s1 = inlined_call_operand.hbm [shape: f32[8,16,16], index: 1, kind: input, shape index: {}]   ;;  %s3819_s2 = inlined_call_operand.hbm [shape: f32[16,16], index: 2, kind: input, shape index: {}]   ;;  %s3820_s3 = inlined_call_operand.hbm [shape: f32[16,16], index: 3, kind: input, shape index: {}]   ;;  %s3821_s4 = inlined_call_operand.hbm [shape: f32[2,8,128], index: 4, kind: output, shape index: {}]  }
   0x1   :  { %3829 = sst [smem:[#allocation16_spill]] %s3817_s0 }
   0x2   :  { %9 = vsyncpa [#allocation3], 0 }
   0x3   :  { %11 = vsyncpa [#allocation3 + $0x1], 0 }
   0x4   :  { %12 = vsyncpa [#allocation6], 0 }
   0x5   :  { %14 = vsyncpa [#allocation6 + $0x1], 0 }
   0x6   :  { %15 = vsyncpa [#allocation9], 0 }
   0x7   :  { %16 = vsyncpa [#allocation4], 0 }
   0x8   :  { %18 = vsyncpa [#allocation4 + $0x1], 0  ;;  %s3288_s15 = smov 0   ;;  %s3290_s16 = smov 0  }
   0x9   :  { %s3292_s17 = smov 0   ;;  %s3294_s18 = smov 0  }
   0xa LB: > { %s3309_s19 = sadd.s32 4294967295, %s3254_s18   ;;  %s2560_s20 = sadd.s32 4294967294, %s3254_s18   ;;  %s3254_s18 = sphi %s3294_s18, %s3851_s18   ;;  %s3250_s17 = sphi %s3292_s17, %s3850_s17   ;;  %s3246_s16 = sphi %s3290_s16, %s3849_s16   ;;  %s3242_s15 = sphi %s3288_s15, %s3848_s15  }
   0xb   : > { %p44_p0 = scmp.ne.s32.totalorder %s3246_s16, %s3242_s15  ;;  %p3822_p1 = scmp.eq.s32.totalorder %s3309_s19, 0 }
   0xc   : > { %p142_p3 = scmp.eq.s32.totalorder %s2560_s20, 1  ;;  %p2561_p5 = scmp.ge.s32.totalorder %s3254_s18, 1 }
   0xd   : > { %p3318_p4 = por %p3822_p1, %p44_p0  ;;  %p149_p7 = scmp.lt.s32.totalorder %s3254_s18, 3 }
   0xe   : > { %p3323_p6 = por %p142_p3, %p44_p0  ;;  %s3256_s24 = smov [#allocation7]  }
   0xf   : > { %s3830_s21 = scalar_select %p3318_p4, 1, 0 }
  0x10   : > { %s3831_s22 = scalar_select %p3323_p6, 1, 0 }
  0x11   : > { %p3328_p8 = pnand %p2561_p5, %p149_p7  ;;  %s161_s25 = sshll.u32 %s3256_s24, 4  ;;  %s3332_s25 = int_to_ptr.vmem [resolvable:$true] %s161_s25 }
  0x12   : > { %s3257_s27 = smov [#allocation8]   ;;  %s3060_s5 = scalar_lea.hbm %s3819_s2, 256 }
  0x13   : > { %p2983_p9 = pneg %p3328_p8  ;;  %s174_s28 = sshll.u32 %s3257_s27, 4  ;;  %s3343_s28 = int_to_ptr.vmem [resolvable:$true] %s174_s28 }
  0x14   : > { %p3061_p12 = scmp.ne.s32.totalorder %s3819_s2, %s3060_s5  ;;  %p3067_p5 = scmp.lt.u32.totalorder %s3060_s5, %s3819_s2 }
  0x15   : > { %p3339_p11 = pnand %p2983_p9, %p3822_p1 }
  0x17   : > { %p3062_p13 = pneg %p3339_p11 }
  0x19   : > { %p3063_p0 = pnand %p3062_p13, %p3061_p12 }
  0x1b   : > { %p3064_p3 = pneg %p3063_p0 }
  0x1d   : > { %p3069_p7 = pnand %p3067_p5, %p3064_p3 }
  0x1f   : > { %3072 = shalt.err (!%p3069_p7)
}
  0x20   : > { %s3073_s10 = scalar_lea.vmem %s3332_s25, 256  ;;  %p3081_p2 = scmp.lt.s32.totalorder %s3332_s25, %s3332_s25 }
  0x21   : > { %p3074_p9 = scmp.ne.s32.totalorder %s3332_s25, %s3073_s10  ;;  %p3082_p12 = scmp.lt.s32.totalorder %s3073_s10, %s3073_s10 }
  0x23   : > { %p3076_p10 = pnand %p3074_p9, %p3062_p13  ;;  %p3083_p0 = por %p3082_p12, %p3081_p2 }
  0x25   : > { %p3077_p1 = pneg %p3076_p10 }
  0x27   : > { %p3084_p6 = pnand %p3083_p0, %p3077_p1 }
  0x29   : > { %3087 = shalt.err (!%p3084_p6)
}
  0x2a   : > { %s3823_s11 = smov 128   ;;  %s3825_s12 = smov 8  }
  0x2b   : > { %2986 = dma.hbm_to_vmem [thread:$0]  (!%p3339_p11), %s3819_s2, 256, %s3332_s25, [#allocation6], %s3823_s11, %s3823_s11, %s3825_s12  }
  0x2c   : > { %s3088_s27 = scalar_lea.hbm %s3820_s3, 256 }
  0x2d   : > { %p3089_p1 = scmp.ne.s32.totalorder %s3820_s3, %s3088_s27  ;;  %p3095_p10 = scmp.lt.u32.totalorder %s3088_s27, %s3820_s3 }
  0x2f   : > { %p3091_p2 = pnand %p3089_p1, %p3062_p13 }
  0x31   : > { %p3092_p6 = pneg %p3091_p2 }
  0x33   : > { %p3097_p3 = pnand %p3095_p10, %p3092_p6 }
  0x35   : > { %3100 = shalt.err (!%p3097_p3)
}
  0x36   : > { %s3101_s25 = scalar_lea.vmem %s3343_s28, 256  ;;  %p3109_p12 = scmp.lt.s32.totalorder %s3343_s28, %s3343_s28 }
  0x37   : > { %p3102_p5 = scmp.ne.s32.totalorder %s3343_s28, %s3101_s25  ;;  %p3110_p0 = scmp.lt.s32.totalorder %s3101_s25, %s3101_s25 }
  0x39   : > { %p3104_p7 = pnand %p3102_p5, %p3062_p13  ;;  %p3111_p1 = por %p3110_p0, %p3109_p12 }
  0x3b   : > { %p3105_p9 = pneg %p3104_p7 }
  0x3d   : > { %p3112_p2 = pnand %p3111_p1, %p3105_p9 }
  0x3f   : > { %3115 = shalt.err (!%p3112_p2)
}
  0x40   : > { %2989 = dma.hbm_to_vmem [thread:$0]  (!%p3339_p11), %s3820_s3, 256, %s3343_s28, [#allocation9], %s3823_s11, %s3823_s11, %s3825_s12  }
  0x41   : > { %s3404_s26 = sadd.s32 1, %s3254_s18   ;;  %s31_s9 = sadd.s32 1, %s3250_s17 }
  0x42   : > { %s28_s10 = ssub.s32 %s3254_s18, %s3404_s26  ;;  %p38_p13 = scmp.ne.s32.totalorder %s3250_s17, %s3246_s16 }
  0x43   : > { %p29_p6 = scmp.eq.s32.totalorder %s28_s10, 0  ;;  %p39_p10 = scmp.eq.s32.totalorder %s3254_s18, 0 }
  0x44   : > { %p3834_p3 = scmp.eq.s32.totalorder %s3309_s19, 1  ;;  %p3003_p7 = scmp.lt.s32.totalorder %s3254_s18, 2 }
  0x45   : > { %s3420_s14 = scalar_select %p29_p6, %s3250_s17, %s31_s9  }
  0x46   : > { %p3414_p5 = por %p3834_p3, %p38_p13  ;;  %p40_p9 = por %p39_p10, %p38_p13 }
  0x47   : > { %s188_s20 = sand.u32 1, %s3250_s17   ;;  %s2664_s28 = sshll.u32 %s3254_s18, 10 }
  0x48   : > { %s3835_s13 = scalar_select %p3414_p5, 1, 0 }
  0x49   : > { %s2565_s24 = sshll.u32 %s188_s20, 6  ;;  %s3836_s0 = sld [smem:[#allocation16_spill]] }
  0x4a   : > { %s192_s5 = scalar_lea.vmem [#allocation2], %s2565_s24  ;;  %p3431_p11 = pnand %p3003_p7, %p40_p9 }
  0x4b   : > { %s200_s6 = sshll.u32 %s192_s5, 4  ;;  %s3438_s9 = scalar_lea.hbm %s3818_s1, %s2664_s28  ;;  %s3429_s6 = int_to_ptr.vmem [resolvable:$true] %s200_s6 }
  0x4c   : > { %s214_s10 = scalar_lea.vmem [#allocation5], %s2565_s24  ;;  %s3442_s29 = scalar_lea.sflag [#allocation3], %s188_s20 }
  0x4d   : > { %s3440_s27 = sshll.u32 %s214_s10, 4  ;;  %p3118_p0 = pneg %p3431_p11  ;;  %s3474_s27 = int_to_ptr.vmem [resolvable:$true] %s3440_s27 }
  0x4f   : > { %s3427_s30 = scalar_lea.hbm %s3836_s0, %s2664_s28  ;;  %s3121_s7 = scalar_lea.hbm %s3836_s0, 2048 }
  0x50   : > { %s3116_s5 = scalar_lea.hbm %s3427_s30, 1024  ;;  %p3122_p13 = scmp.lt.u32.totalorder %s3427_s30, %s3836_s0 }
  0x51   : > { %p3117_p12 = scmp.ne.s32.totalorder %s3427_s30, %s3116_s5  ;;  %p3123_p6 = scmp.lt.u32.totalorder %s3121_s7, %s3116_s5 }
  0x52   : > { %p3125_p3 = scmp.lt.u32.totalorder %s3116_s5, %s3427_s30 }
  0x53   : > { %p3119_p1 = pnand %p3118_p0, %p3117_p12  ;;  %p3124_p10 = por %p3123_p6, %p3122_p13 }
  0x55   : > { %p3120_p2 = pneg %p3119_p1  ;;  %p3126_p7 = por %p3125_p3, %p3124_p10 }
  0x57   : > { %p3127_p9 = pnand %p3126_p7, %p3120_p2 }
  0x59   : > { %3130 = shalt.err (!%p3127_p9)
}
  0x5a   : > { %s3131_s20 = scalar_lea.vmem %s3429_s6, 1024  ;;  %s3260_s11 = smov [#allocation2]  }
  0x5b   : > { %p3132_p12 = scmp.ne.s32.totalorder %s3429_s6, %s3131_s20  ;;  %s3136_s12 = sshll.u32 %s3260_s11, 4  ;;  %s3137_s12 = int_to_ptr.vmem [resolvable:$false] %s3136_s12 }
  0x5c   : > { %s3138_s24 = scalar_lea.vmem %s3137_s12, 2048  ;;  %p3139_p4 = scmp.lt.s32.totalorder %s3429_s6, %s3137_s12 }
  0x5d   : > { %p3134_p1 = pnand %p3132_p12, %p3118_p0  ;;  %p3140_p13 = scmp.lt.s32.totalorder %s3138_s24, %s3131_s20 }
  0x5f   : > { %p3135_p5 = pneg %p3134_p1  ;;  %p3141_p6 = por %p3140_p13, %p3139_p4 }
  0x61   : > { %p3142_p10 = pnand %p3141_p6, %p3135_p5 }
  0x63   : > { %3145 = shalt.err (!%p3142_p10)
}
  0x64   : > { %s3838_s10 = smov 8   ;;  %s3839_s5 = smov 128  }
  0x65   : > { %2993 = dma.hbm_to_vmem [thread:$0]  (!%p3431_p11), %s3427_s30, 1024, %s3429_s6, %s3442_s29, %s3839_s5, %s3839_s5, %s3838_s10  }
  0x66   : > { %s210_s7 = sand.u32 1, %s3254_s18   ;;  %s3146_s28 = scalar_lea.hbm %s3438_s9, 1024 }
  0x67   : > { %s3477_s8 = scalar_lea.sflag [#allocation6], %s210_s7  ;;  %p3147_p4 = scmp.ne.s32.totalorder %s3438_s9, %s3146_s28 }
  0x68   : > { %s3151_s12 = scalar_lea.hbm %s3818_s1, 2048  ;;  %p3152_p3 = scmp.lt.u32.totalorder %s3438_s9, %s3818_s1 }
  0x69   : > { %p3149_p5 = pnand %p3147_p4, %p3118_p0  ;;  %p3153_p7 = scmp.lt.u32.totalorder %s3151_s12, %s3146_s28 }
  0x6a   : > { %p3155_p12 = scmp.lt.u32.totalorder %s3146_s28, %s3438_s9 }
  0x6b   : > { %p3150_p2 = pneg %p3149_p5  ;;  %p3154_p9 = por %p3153_p7, %p3152_p3 }
  0x6d   : > { %p3156_p1 = por %p3155_p12, %p3154_p9 }
  0x6f   : > { %p3157_p13 = pnand %p3156_p1, %p3150_p2 }
  0x71   : > { %3160 = shalt.err (!%p3157_p13)
}
  0x72   : > { %s3161_s30 = scalar_lea.vmem %s3474_s27, 1024  ;;  %s3261_s6 = smov [#allocation5]  }
  0x73   : > { %p3162_p6 = scmp.ne.s32.totalorder %s3474_s27, %s3161_s30  ;;  %s3166_s29 = sshll.u32 %s3261_s6, 4  ;;  %s3167_s29 = int_to_ptr.vmem [resolvable:$false] %s3166_s29 }
  0x74   : > { %s3168_s0 = scalar_lea.vmem %s3167_s29, 2048  ;;  %p3169_p5 = scmp.lt.s32.totalorder %s3474_s27, %s3167_s29 }
  0x75   : > { %p3164_p10 = pnand %p3162_p6, %p3118_p0  ;;  %p3170_p3 = scmp.lt.s32.totalorder %s3168_s0, %s3161_s30 }
  0x77   : > { %p3165_p4 = pneg %p3164_p10  ;;  %p3171_p7 = por %p3170_p3, %p3169_p5 }
  0x79   : > { %p3172_p9 = pnand %p3171_p7, %p3165_p4 }
  0x7b   : > { %3175 = shalt.err (!%p3172_p9)
}
  0x7c   : > { %2996 = dma.hbm_to_vmem [thread:$0]  (!%p3431_p11), %s3438_s9, 1024, %s3474_s27, %s3477_s8, %s3839_s5, %s3839_s5, %s3838_s10  }
  0x7d   : > { %234 = sbr.rel (%p3328_p8) target bundleno = 1018 (0x3fa), region = 36  ;;  %s3509_s7 = sand.u32 (!%p3328_p8), 1, %s3246_s16  }
  0x7e   : > { %s2574_s28 = sshll.u32 (!%p3328_p8), %s3509_s7, 6  ;;  %s237_s20 = scalar_lea.sflag (!%p3328_p8), [#allocation3], %s3509_s7 }
  0x7f   : > { %s3513_s11 = scalar_lea.vmem (!%p3328_p8), [#allocation2], %s2574_s28  ;;  %p3840_p0 = scmp.ne.s32.totalorder (!%p3328_p8), %s3830_s21, 0 }
  0x84   : > { %3221 = dma.done.wait (%p3840_p0), %s237_s20, 1024  }
  0x85   : > { %3223 = vsyncadd (%p3840_p0), %s237_s20, 4294966272  ;;  %s245_s25 = sand.u32 1, %s3309_s19   ;;  %s3520_s9 = scalar_lea.vmem [#allocation5], %s2574_s28 }
  0x86   : > { %s246_s23 = scalar_lea.sflag [#allocation6], %s245_s25 }
  0x87   : > { %3225 = dma.done.wait (%p3840_p0), %s246_s23, 1024  }
  0x88   : > { %3227 = vsyncadd (%p3840_p0), %s246_s23, 4294966272  ;;  %p3841_p8 = scmp.eq.s32.totalorder %s3309_s19, 0 }
  0x8a   : > { %3229 = dma.done.wait (%p3841_p8), [#allocation6], 256   ;;  %p3842_p11 = pmov %p3841_p8 }
  0x8b   : > { %p3843_p2 = pmov %p3841_p8 }
  0x8c   : > { %3231 = vsyncadd (%p3842_p11), [#allocation6], 4294967040 }
  0x8d   : > { %3233 = dma.done.wait (%p3843_p2), [#allocation9], 256   ;;  %p3844_p12 = pmov %p3843_p2 }
  0x8e   : > { %vm307_vm0 = vcmask 130048   ;;  %v305_v0 = vld [vmem:[#allocation7] sm:$0xff]  ;;  %v306_v1 = vld [vmem:[#allocation7 + $0x8] sm:$0xff]  ;;  %v3548_v5 = vld [vmem:[%s3513_s11 + $0x10] sm:$0xff]  ;;  %s2578_s21 = sshll.u32 %s3509_s7, 3  ;;  %s2660_s5 = sshll.u32 %s3309_s19, 7 }
  0x8f   : > { %3235 = vsyncadd (%p3844_p12), [#allocation9], 4294967040  ;;  %v3535_v2 = vld [vmem:[%s3513_s11] sm:$0xff]  ;;  %v3537_v3 = vpack.c.bf16 %v306_v1, %v305_v0  ;;  %v3544_v4 = vld [vmem:[%s3513_s11 + $0x8] sm:$0xff]  ;;  %v1084_v21 = vmul.f32 %v3548_v5, %v3548_v5  ;;  %s286_s27 = scalar_lea.vmem [#allocation10], %s2578_s21  ;;  %s3775_s30 = scalar_lea.hbm %s3821_s4, %s2660_s5 }
  0x90   : > { %2771 = vmatprep.mubr.msk.f32.mxu0 %vm307_vm0, %v3535_v2  ;;  %v3556_v6 = vld [vmem:[%s3513_s11 + $0x18] sm:$0xff]  ;;  %v3559_v7 = vld [vmem:[%s3513_s11 + $0x20] sm:$0xff]  ;;  %v3567_v8 = vld [vmem:[%s3513_s11 + $0x28] sm:$0xff]  ;;  %v1082_v18 = vmul.f32 %v3535_v2, %v3535_v2  ;;  %v1083_v20 = vmul.f32 %v3544_v4, %v3544_v4  ;;  %s2448_s10 = sshll.u32 %s286_s27, 4  ;;  %s2435_s6 = scalar_lea.sflag [#allocation4], %s3509_s7  ;;  %s3770_s10 = int_to_ptr.vmem [resolvable:$true] %s2448_s10 }
  0x91   : > { %2928 = vmatprep.subr.bf16.mxu0 %v3537_v3  ;;  %v3570_v9 = vld [vmem:[%s3513_s11 + $0x30] sm:$0xff]  ;;  %v3577_v10 = vld [vmem:[%s3513_s11 + $0x38] sm:$0xff]  ;;  %v297_v11 = vld [vmem:[%s3520_s9] sm:$0xff]  ;;  %v1085_v22 = vmul.f32 %v3556_v6, %v3556_v6  ;;  %v1086_v23 = vmul.f32 %v3559_v7, %v3559_v7  ;;  %v1087_v24 = vmul.f32 %v3567_v8, %v3567_v8  ;;  %s3176_s29 = scalar_lea.vmem %s3770_s10, 128  ;;  %p3845_p13 = scmp.ne.s32.totalorder %s3835_s13, 0 }
  0x92   : > { %2930 = vmatpush3.bf16.msra.mxu0 %v3537_v3  ;;  %v298_v12 = vld [vmem:[%s3520_s9 + $0x8] sm:$0xff]  ;;  %v299_v13 = vld [vmem:[%s3520_s9 + $0x10] sm:$0xff]  ;;  %v300_v14 = vld [vmem:[%s3520_s9 + $0x18] sm:$0xff]  ;;  %v1088_v25 = vmul.f32 %v3570_v9, %v3570_v9  ;;  %v1089_v26 = vmul.f32 %v3577_v10, %v3577_v10  ;;  %v1476_v27 = vmul.f32 %v297_v11, %v297_v11  ;;  %v1870_v35 = vmul.f32 %v297_v11, %v3535_v2  ;;  %p3177_p1 = scmp.ne.s32.totalorder %s3770_s10, %s3176_s29  ;;  %s3262_s19 = smov [#allocation10]  }
  0x93   : > { %2936 = vmatprep.subr.bf16.mxu0 %v3537_v3  ;;  %v301_v15 = vld [vmem:[%s3520_s9 + $0x20] sm:$0xff]  ;;  %v302_v16 = vld [vmem:[%s3520_s9 + $0x28] sm:$0xff]  ;;  %v303_v17 = vld [vmem:[%s3520_s9 + $0x30] sm:$0xff]  ;;  %v1477_v28 = vmul.f32 %v298_v12, %v298_v12  ;;  %v1478_v29 = vmul.f32 %v299_v13, %v299_v13  ;;  %v1479_v30 = vmul.f32 %v300_v14, %v300_v14  ;;  %v1871_v36 = vmul.f32 %v298_v12, %v3544_v4  ;;  %s3180_s0 = sshll.u32 %s3262_s19, 4  ;;  %s3181_s0 = int_to_ptr.vmem [resolvable:$false] %s3180_s0 }
  0x94   : > { %v304_v19 = vld [vmem:[%s3520_s9 + $0x38] sm:$0xff]  ;;  %v1480_v31 = vmul.f32 %v301_v15, %v301_v15  ;;  %v1481_v32 = vmul.f32 %v302_v16, %v302_v16  ;;  %v1482_v33 = vmul.f32 %v303_v17, %v303_v17  ;;  %v1872_v37 = vmul.f32 %v299_v13, %v3548_v5  ;;  %v565_v44 = vld [vmem:[#allocation8] sm:$0xff]  ;;  %p3178_p6 = pnand %p3177_p1, %p3845_p13  ;;  %s3182_s28 = scalar_lea.vmem %s3181_s0, 256 }
  0x95   : > { %2772 = vmatmul.mubr.msk.f32.vlgmr.msra.gmra.mrb[0].mxu0 %vm307_vm0, %v3544_v4  ;;  %v1483_v34 = vmul.f32 %v304_v19, %v304_v19  ;;  %v1873_v38 = vmul.f32 %v300_v14, %v3556_v6  ;;  %v1874_v39 = vmul.f32 %v301_v15, %v3559_v7  ;;  %v1875_v40 = vmul.f32 %v302_v16, %v3567_v8  ;;  %v566_v45 = vld [vmem:[#allocation8 + $0x8] sm:$0xff]  ;;  %p3183_p4 = scmp.lt.s32.totalorder %s3770_s10, %s3181_s0  ;;  %p3184_p5 = scmp.lt.s32.totalorder %s3182_s28, %s3176_s29 }
  0x96   : > { %2938 = vmatpush3.bf16.msra.mxu0 %v3537_v3  ;;  %2774 = vmatprep.mubr.msk.f32.mxu0 %vm307_vm0, %v3548_v5  ;;  %v1876_v41 = vmul.f32 %v303_v17, %v3570_v9  ;;  %v1877_v42 = vmul.f32 %v304_v19, %v3577_v10  ;;  %v3650_v47 = vpack.c.bf16 %v566_v45, %v565_v44  ;;  %p3179_p10 = pneg %p3178_p6 }
  0x97   : > { %2944 = vmatprep.subr.bf16.mxu0 %v3537_v3  ;;  %p3185_p3 = por %p3184_p5, %p3183_p4 }
  0x98   : > { %2932 = vmatprep.subr.bf16.mxu1 %v3650_v47 }
  0x99   : > { %2775 = vmatmul.mubr.msk.f32.gmra.mrb[2].mxu0 %vm307_vm0, %v3556_v6  ;;  %2934 = vmatpush3.bf16.msra.mxu1 %v3650_v47  ;;  %p3186_p7 = pnand %p3185_p3, %p3179_p10 }
  0x9a   : > { %2777 = vmatprep.mubr.msk.f32.mxu0 %vm307_vm0, %v3559_v7  ;;  %2940 = vmatprep.subr.bf16.mxu1 %v3650_v47 }
  0x9d   : > { %2778 = vmatmul.mubr.msk.f32.gmra.mrb[4].mxu0 %vm307_vm0, %v3567_v8 }
  0x9e   : > { %2780 = vmatprep.mubr.msk.f32.mxu0 %vm307_vm0, %v3570_v9 }
  0xa1   : > { %2781 = vmatmul.mubr.msk.f32.gmra.mrb[6].mxu0 %vm307_vm0, %v3577_v10 }
  0xa2   : > { %2803 = vmatprep.mubr.msk.f32.mxu0 %vm307_vm0, %v297_v11 }
  0xa5   : > { %2804 = vmatmul.mubr.msk.f32.vlgmr.msra.gmra.mrb[8].mxu0 %vm307_vm0, %v298_v12 }
  0xa6   : > { %2946 = vmatpush3.bf16.msra.mxu0 %v3537_v3  ;;  %2806 = vmatprep.mubr.msk.f32.mxu0 %vm307_vm0, %v299_v13 }
  0xa7   : > { %2952 = vmatprep.subr.bf16.mxu0 %v3537_v3 }
  0xa9   : > { %2807 = vmatmul.mubr.msk.f32.gmra.mrb[10].mxu0 %vm307_vm0, %v300_v14 }
  0xaa   : > { %2809 = vmatprep.mubr.msk.f32.mxu0 %vm307_vm0, %v301_v15 }
  0xad   : > { %2810 = vmatmul.mubr.msk.f32.gmra.mrb[12].mxu0 %vm307_vm0, %v302_v16 }
  0xae   : > { %2812 = vmatprep.mubr.msk.f32.mxu0 %vm307_vm0, %v303_v17 }
  0xb1   : > { %2813 = vmatmul.mubr.msk.f32.gmra.mrb[14].mxu0 %vm307_vm0, %v304_v19 }
  0xb2   : > { %2835 = vmatprep.mubr.msk.f32.mxu0 %vm307_vm0, %v1082_v18 }
  0xb5   : > { %2836 = vmatmul.mubr.msk.f32.vlgmr.msra.gmra.mrb[16].mxu0 %vm307_vm0, %v1083_v20 }
  0xb6   : > { %2954 = vmatpush3.bf16.msra.mxu0 %v3537_v3  ;;  %2838 = vmatprep.mubr.msk.f32.mxu0 %vm307_vm0, %v1084_v21 }
  0xb7   : > { %2960 = vmatprep.subr.bf16.mxu0 %v3537_v3 }
  0xb9   : > { %2839 = vmatmul.mubr.msk.f32.gmra.mrb[18].mxu0 %vm307_vm0, %v1085_v22 }
  0xba   : > { %2841 = vmatprep.mubr.msk.f32.mxu0 %vm307_vm0, %v1086_v23 }
  0xbd   : > { %2842 = vmatmul.mubr.msk.f32.gmra.mrb[20].mxu0 %vm307_vm0, %v1087_v24 }
  0xbe   : > { %2844 = vmatprep.mubr.msk.f32.mxu0 %vm307_vm0, %v1088_v25 }
  0xc1   : > { %2845 = vmatmul.mubr.msk.f32.gmra.mrb[22].mxu0 %vm307_vm0, %v1089_v26 }
  0xc2   : > { %2867 = vmatprep.mubr.msk.f32.mxu0 %vm307_vm0, %v1476_v27 }
  0xc5   : > { %2868 = vmatmul.mubr.msk.f32.vlgmr.msra.gmra.mrb[24].mxu0 %vm307_vm0, %v1477_v28 }
  0xc6   : > { %2962 = vmatpush3.bf16.msra.mxu0 %v3537_v3  ;;  %2870 = vmatprep.mubr.msk.f32.mxu0 %vm307_vm0, %v1478_v29 }
  0xc9   : > { %2871 = vmatmul.mubr.msk.f32.gmra.mrb[26].mxu0 %vm307_vm0, %v1479_v30 }
  0xca   : > { %2873 = vmatprep.mubr.msk.f32.mxu0 %vm307_vm0, %v1480_v31 }
  0xcd   : > { %2874 = vmatmul.mubr.msk.f32.gmra.mrb[28].mxu0 %vm307_vm0, %v1481_v32 }
  0xce   : > { %2876 = vmatprep.mubr.msk.f32.mxu0 %vm307_vm0, %v1482_v33 }
  0xd1   : > { %2877 = vmatmul.mubr.msk.f32.gmra.mrb[30].mxu0 %vm307_vm0, %v1483_v34 }
  0xd2   : > { %2899 = vmatprep.mubr.msk.f32.mxu0 %vm307_vm0, %v1870_v35 }
  0xd5   : > { %2900 = vmatmul.mubr.msk.f32.vlgmr.msra.gmra.mrb[32].mxu0 %vm307_vm0, %v1871_v36 }
  0xd6   : > { %2902 = vmatprep.mubr.msk.f32.mxu0 %vm307_vm0, %v1872_v37 }
  0xd9   : > { %2903 = vmatmul.mubr.msk.f32.gmra.mrb[34].mxu0 %vm307_vm0, %v1873_v38 }
  0xda   : > { %2905 = vmatprep.mubr.msk.f32.mxu0 %vm307_vm0, %v1874_v39 }
  0xdd   : > { %2906 = vmatmul.mubr.msk.f32.gmra.mrb[36].mxu0 %vm307_vm0, %v1875_v40 }
  0xde   : > { %2908 = vmatprep.mubr.msk.f32.mxu0 %vm307_vm0, %v1876_v41 }
  0xe1   : > { %2909 = vmatmul.mubr.msk.f32.gmra.mrb[38].mxu0 %vm307_vm0, %v1877_v42 }
 0x168   : > { %v2773_v43 = vpop.f32.mrb[0].mxu0 }
 0x169   : > { %v398_v46 = vpop.f32.mrb[1].mxu0 }
 0x16a   : > { %437 = vxpose.xlu0.b32.start [1/2] (short) (narrow) %v398_v46, 16 }
 0x16c   : > { %v2776_v48 = vpop.f32.mrb[2].mxu0 }
 0x16d   : > { %v408_v49 = vpop.f32.mrb[3].mxu0 }
 0x16e   : > { %438 = vxpose.xlu0.b32.end [2/2] (short) (narrow) %v2773_v43, 16  ;;  %469 = vxpose.xlu1.b32.start [1/2] (short) (narrow) %v408_v49, 16 }
 0x170   : > { %v2779_v50 = vpop.f32.mrb[4].mxu0 }
 0x171   : > { %v418_v51 = vpop.f32.mrb[5].mxu0 }
 0x172   : > { %470 = vxpose.xlu1.b32.end [2/2] (short) (narrow) %v2776_v48, 16  ;;  %501 = vxpose.xlu0.b32.start [1/2] (short) (narrow) %v418_v51, 16 }
 0x174   : > { %v2782_v52 = vpop.f32.mrb[6].mxu0 }
 0x175   : > { %v428_v53 = vpop.f32.mrb[7].mxu0 }
 0x176   : > { %502 = vxpose.xlu0.b32.end [2/2] (short) (narrow) %v2779_v50, 16  ;;  %533 = vxpose.xlu1.b32.start [1/2] (short) (narrow) %v428_v53, 16 }
 0x178   : > { %v2805_v54 = vpop.f32.mrb[8].mxu0 }
 0x179   : > { %v786_v55 = vpop.f32.mrb[9].mxu0 }
 0x17a   : > { %534 = vxpose.xlu1.b32.end [2/2] (short) (narrow) %v2782_v52, 16  ;;  %825 = vxpose.xlu0.b32.start [1/2] (short) (narrow) %v786_v55, 16 }
 0x17c   : > { %v2808_v56 = vpop.f32.mrb[10].mxu0 }
 0x17d   : > { %v796_v57 = vpop.f32.mrb[11].mxu0 }
 0x17e   : > { %826 = vxpose.xlu0.b32.end [2/2] (short) (narrow) %v2805_v54, 16  ;;  %857 = vxpose.xlu1.b32.start [1/2] (short) (narrow) %v796_v57, 16 }
 0x180   : > { %v2811_v58 = vpop.f32.mrb[12].mxu0 }
 0x181   : > { %v806_v59 = vpop.f32.mrb[13].mxu0 }
 0x182   : > { %858 = vxpose.xlu1.b32.end [2/2] (short) (narrow) %v2808_v56, 16  ;;  %889 = vxpose.xlu0.b32.start [1/2] (short) (narrow) %v806_v59, 16 }
 0x184   : > { %v2814_v60 = vpop.f32.mrb[14].mxu0 }
 0x185   : > { %v816_v61 = vpop.f32.mrb[15].mxu0 }
 0x186   : > { %890 = vxpose.xlu0.b32.end [2/2] (short) (narrow) %v2811_v58, 16  ;;  %921 = vxpose.xlu1.b32.start [1/2] (short) (narrow) %v816_v61, 16 }
 0x188   : > { %v2837_v62 = vpop.f32.mrb[16].mxu0 }
 0x189   : > { %v1180_v63 = vpop.f32.mrb[17].mxu0 }
 0x18a   : > { %922 = vxpose.xlu1.b32.end [2/2] (short) (narrow) %v2814_v60, 16  ;;  %1219 = vxpose.xlu0.b32.start [1/2] (short) (narrow) %v1180_v63, 16 }
 0x18c   : > { %v2840_v0 = vpop.f32.mrb[18].mxu0 }
 0x18d   : > { %v1190_v1 = vpop.f32.mrb[19].mxu0 }
 0x18e   : > { %1220 = vxpose.xlu0.b32.end [2/2] (short) (narrow) %v2837_v62, 16  ;;  %1251 = vxpose.xlu1.b32.start [1/2] (short) (narrow) %v1190_v1, 16 }
 0x190   : > { %v2843_v2 = vpop.f32.mrb[20].mxu0 }
 0x191   : > { %v1200_v3 = vpop.f32.mrb[21].mxu0 }
 0x192   : > { %1252 = vxpose.xlu1.b32.end [2/2] (short) (narrow) %v2840_v0, 16  ;;  %1283 = vxpose.xlu0.b32.start [1/2] (short) (narrow) %v1200_v3, 16 }
 0x194   : > { %v2846_v4 = vpop.f32.mrb[22].mxu0 }
 0x195   : > { %v1210_v5 = vpop.f32.mrb[23].mxu0 }
 0x196   : > { %1284 = vxpose.xlu0.b32.end [2/2] (short) (narrow) %v2843_v2, 16  ;;  %1315 = vxpose.xlu1.b32.start [1/2] (short) (narrow) %v1210_v5, 16 }
 0x198   : > { %v2869_v6 = vpop.f32.mrb[24].mxu0 }
 0x199   : > { %v1574_v7 = vpop.f32.mrb[25].mxu0 }
 0x19a   : > { %1316 = vxpose.xlu1.b32.end [2/2] (short) (narrow) %v2846_v4, 16  ;;  %1613 = vxpose.xlu0.b32.start [1/2] (short) (narrow) %v1574_v7, 16 }
 0x19c   : > { %v2872_v8 = vpop.f32.mrb[26].mxu0 }
 0x19d   : > { %v1584_v9 = vpop.f32.mrb[27].mxu0 }
 0x19e   : > { %1614 = vxpose.xlu0.b32.end [2/2] (short) (narrow) %v2869_v6, 16  ;;  %1645 = vxpose.xlu1.b32.start [1/2] (short) (narrow) %v1584_v9, 16 }
 0x1a0   : > { %v2875_v10 = vpop.f32.mrb[28].mxu0 }
 0x1a1   : > { %v1594_v11 = vpop.f32.mrb[29].mxu0 }
 0x1a2   : > { %1646 = vxpose.xlu1.b32.end [2/2] (short) (narrow) %v2872_v8, 16  ;;  %1677 = vxpose.xlu0.b32.start [1/2] (short) (narrow) %v1594_v11, 16 }
 0x1a4   : > { %v2878_v12 = vpop.f32.mrb[30].mxu0 }
 0x1a5   : > { %v1604_v13 = vpop.f32.mrb[31].mxu0 }
 0x1a6   : > { %1678 = vxpose.xlu0.b32.end [2/2] (short) (narrow) %v2875_v10, 16  ;;  %1709 = vxpose.xlu1.b32.start [1/2] (short) (narrow) %v1604_v13, 16 }
 0x1a8   : > { %v2901_v14 = vpop.f32.mrb[32].mxu0 }
 0x1a9   : > { %v1968_v15 = vpop.f32.mrb[33].mxu0 }
 0x1aa   : > { %1710 = vxpose.xlu1.b32.end [2/2] (short) (narrow) %v2878_v12, 16  ;;  %2007 = vxpose.xlu0.b32.start [1/2] (short) (narrow) %v1968_v15, 16 }
 0x1ac   : > { %v2904_v16 = vpop.f32.mrb[34].mxu0 }
 0x1ad   : > { %v1978_v17 = vpop.f32.mrb[35].mxu0 }
 0x1ae   : > { %2008 = vxpose.xlu0.b32.end [2/2] (short) (narrow) %v2901_v14, 16  ;;  %2039 = vxpose.xlu1.b32.start [1/2] (short) (narrow) %v1978_v17, 16 }
 0x1b0   : > { %v2907_v18 = vpop.f32.mrb[36].mxu0 }
 0x1b1   : > { %v1988_v19 = vpop.f32.mrb[37].mxu0 }
 0x1b2   : > { %2040 = vxpose.xlu1.b32.end [2/2] (short) (narrow) %v2904_v16, 16  ;;  %2071 = vxpose.xlu0.b32.start [1/2] (short) (narrow) %v1988_v19, 16 }
 0x1b4   : > { %v2910_v20 = vpop.f32.mrb[38].mxu0 }
 0x1b5   : > { %v1998_v21 = vpop.f32.mrb[39].mxu0 }
 0x1b6   : > { %2072 = vxpose.xlu0.b32.end [2/2] (short) (narrow) %v2907_v18, 16  ;;  %2103 = vxpose.xlu1.b32.start [1/2] (short) (narrow) %v1998_v21, 16 }
 0x1ba   : > { %2104 = vxpose.xlu1.b32.end [2/2] (short) (narrow) %v2910_v20, 16 }
 0x1ea   : > { %v453_v22 = vpop.trf.xlu0 }
 0x1eb   : > { %2787 = vmatprep.mubr.msk.f32.mxu1 %vm307_vm0, %v453_v22 }
 0x1ee   : > { %v454_v23 = vpop.trf.xlu0  ;;  %v485_v24 = vpop.trf.xlu1 }
 0x1ef   : > { %2788 = vmatmul.mubr.msk.f32.vlgmr.msra.gmra.mrb[0].mxu1 %vm307_vm0, %v454_v23 }
 0x1f0   : > { %2790 = vmatprep.mubr.msk.f32.mxu1 %vm307_vm0, %v485_v24  ;;  %2942 = vmatpush3.bf16.msra.mxu1 %v3650_v47 }
 0x1f1   : > { %2948 = vmatprep.subr.bf16.mxu1 %v3650_v47 }
 0x1f2   : > { %v486_v25 = vpop.trf.xlu1  ;;  %v517_v26 = vpop.trf.xlu0 }
 0x1f3   : > { %2791 = vmatmul.mubr.msk.f32.gmra.mrb[2].mxu1 %vm307_vm0, %v486_v25 }
 0x1f4   : > { %2793 = vmatprep.mubr.msk.f32.mxu1 %vm307_vm0, %v517_v26 }
 0x1f6   : > { %v518_v27 = vpop.trf.xlu0  ;;  %v549_v28 = vpop.trf.xlu1 }
 0x1f7   : > { %2794 = vmatmul.mubr.msk.f32.gmra.mrb[4].mxu1 %vm307_vm0, %v518_v27 }
 0x1f8   : > { %2796 = vmatprep.mubr.msk.f32.mxu1 %vm307_vm0, %v549_v28 }
 0x1fa   : > { %v550_v29 = vpop.trf.xlu1  ;;  %v841_v30 = vpop.trf.xlu0 }
 0x1fb   : > { %2797 = vmatmul.mubr.msk.f32.gmra.mrb[6].mxu1 %vm307_vm0, %v550_v29 }
 0x1fc   : > { %2819 = vmatprep.mubr.msk.f32.mxu1 %vm307_vm0, %v841_v30 }
 0x1fe   : > { %v842_v31 = vpop.trf.xlu0  ;;  %v873_v32 = vpop.trf.xlu1 }
 0x1ff   : > { %2820 = vmatmul.mubr.msk.f32.vlgmr.msra.gmra.mrb[8].mxu1 %vm307_vm0, %v842_v31 }
 0x200   : > { %2822 = vmatprep.mubr.msk.f32.mxu1 %vm307_vm0, %v873_v32  ;;  %2950 = vmatpush3.bf16.msra.mxu1 %v3650_v47 }
 0x201   : > { %2956 = vmatprep.subr.bf16.mxu1 %v3650_v47 }
 0x202   : > { %v874_v33 = vpop.trf.xlu1  ;;  %v905_v34 = vpop.trf.xlu0 }
 0x203   : > { %2823 = vmatmul.mubr.msk.f32.gmra.mrb[10].mxu1 %vm307_vm0, %v874_v33 }
 0x204   : > { %2825 = vmatprep.mubr.msk.f32.mxu1 %vm307_vm0, %v905_v34 }
 0x206   : > { %v906_v35 = vpop.trf.xlu0  ;;  %v937_v36 = vpop.trf.xlu1 }
 0x207   : > { %2826 = vmatmul.mubr.msk.f32.gmra.mrb[12].mxu1 %vm307_vm0, %v906_v35 }
 0x208   : > { %2828 = vmatprep.mubr.msk.f32.mxu1 %vm307_vm0, %v937_v36 }
 0x20a   : > { %v938_v37 = vpop.trf.xlu1  ;;  %v1235_v38 = vpop.trf.xlu0 }
 0x20b   : > { %2829 = vmatmul.mubr.msk.f32.gmra.mrb[14].mxu1 %vm307_vm0, %v938_v37 }
 0x20c   : > { %2851 = vmatprep.mubr.msk.f32.mxu1 %vm307_vm0, %v1235_v38 }
 0x20e   : > { %v1236_v39 = vpop.trf.xlu0  ;;  %v1267_v40 = vpop.trf.xlu1 }
 0x20f   : > { %2852 = vmatmul.mubr.msk.f32.vlgmr.msra.gmra.mrb[16].mxu1 %vm307_vm0, %v1236_v39 }
 0x210   : > { %2854 = vmatprep.mubr.msk.f32.mxu1 %vm307_vm0, %v1267_v40  ;;  %2958 = vmatpush3.bf16.msra.mxu1 %v3650_v47 }
 0x211   : > { %2964 = vmatprep.subr.bf16.mxu1 %v3650_v47 }
 0x212   : > { %v1268_v41 = vpop.trf.xlu1  ;;  %v1299_v42 = vpop.trf.xlu0 }
 0x213   : > { %2855 = vmatmul.mubr.msk.f32.gmra.mrb[18].mxu1 %vm307_vm0, %v1268_v41 }
 0x214   : > { %2857 = vmatprep.mubr.msk.f32.mxu1 %vm307_vm0, %v1299_v42 }
 0x216   : > { %v1300_v43 = vpop.trf.xlu0  ;;  %v1331_v44 = vpop.trf.xlu1 }
 0x217   : > { %2858 = vmatmul.mubr.msk.f32.gmra.mrb[20].mxu1 %vm307_vm0, %v1300_v43 }
 0x218   : > { %2860 = vmatprep.mubr.msk.f32.mxu1 %vm307_vm0, %v1331_v44 }
 0x21a   : > { %v1332_v45 = vpop.trf.xlu1  ;;  %v1629_v46 = vpop.trf.xlu0 }
 0x21b   : > { %2861 = vmatmul.mubr.msk.f32.gmra.mrb[22].mxu1 %vm307_vm0, %v1332_v45 }
 0x21c   : > { %2883 = vmatprep.mubr.msk.f32.mxu1 %vm307_vm0, %v1629_v46 }
 0x21e   : > { %v1630_v48 = vpop.trf.xlu0  ;;  %v1661_v49 = vpop.trf.xlu1 }
 0x21f   : > { %2884 = vmatmul.mubr.msk.f32.vlgmr.msra.gmra.mrb[24].mxu1 %vm307_vm0, %v1630_v48 }
 0x220   : > { %2886 = vmatprep.mubr.msk.f32.mxu1 %vm307_vm0, %v1661_v49  ;;  %2966 = vmatpush3.bf16.msra.mxu1 %v3650_v47 }
 0x222   : > { %v1662_v50 = vpop.trf.xlu1  ;;  %v1693_v51 = vpop.trf.xlu0 }
 0x223   : > { %2887 = vmatmul.mubr.msk.f32.gmra.mrb[26].mxu1 %vm307_vm0, %v1662_v50 }
 0x224   : > { %2889 = vmatprep.mubr.msk.f32.mxu1 %vm307_vm0, %v1693_v51 }
 0x226   : > { %v1694_v52 = vpop.trf.xlu0  ;;  %v1725_v53 = vpop.trf.xlu1 }
 0x227   : > { %2890 = vmatmul.mubr.msk.f32.gmra.mrb[28].mxu1 %vm307_vm0, %v1694_v52 }
 0x228   : > { %2892 = vmatprep.mubr.msk.f32.mxu1 %vm307_vm0, %v1725_v53 }
 0x22a   : > { %v1726_v54 = vpop.trf.xlu1  ;;  %v2023_v55 = vpop.trf.xlu0 }
 0x22b   : > { %2893 = vmatmul.mubr.msk.f32.gmra.mrb[30].mxu1 %vm307_vm0, %v1726_v54 }
 0x22c   : > { %2915 = vmatprep.mubr.msk.f32.mxu1 %vm307_vm0, %v2023_v55 }
 0x22e   : > { %v2024_v56 = vpop.trf.xlu0  ;;  %v2055_v47 = vpop.trf.xlu1 }
 0x22f   : > { %2916 = vmatmul.mubr.msk.f32.vlgmr.msra.gmra.mrb[32].mxu1 %vm307_vm0, %v2024_v56 }
 0x230   : > { %2918 = vmatprep.mubr.msk.f32.mxu1 %vm307_vm0, %v2055_v47 }
 0x232   : > { %v2056_v57 = vpop.trf.xlu1  ;;  %v2087_v58 = vpop.trf.xlu0 }
 0x233   : > { %2919 = vmatmul.mubr.msk.f32.gmra.mrb[34].mxu1 %vm307_vm0, %v2056_v57 }
 0x234   : > { %2921 = vmatprep.mubr.msk.f32.mxu1 %vm307_vm0, %v2087_v58 }
 0x236   : > { %v2088_v59 = vpop.trf.xlu0  ;;  %v2119_v60 = vpop.trf.xlu1 }
 0x237   : > { %2922 = vmatmul.mubr.msk.f32.gmra.mrb[36].mxu1 %vm307_vm0, %v2088_v59 }
 0x238   : > { %2924 = vmatprep.mubr.msk.f32.mxu1 %vm307_vm0, %v2119_v60 }
 0x23a   : > { %v2120_v61 = vpop.trf.xlu1 }
 0x23b   : > { %2925 = vmatmul.mubr.msk.f32.gmra.mrb[38].mxu1 %vm307_vm0, %v2120_v61 }
 0x2c2   : > { %v2789_v62 = vpop.f32.mrb[0].mxu1 }
 0x2c3   : > { %v657_v63 = vpop.f32.mrb[1].mxu1  ;;  %v2265_v7 = vmul.f32 %v2789_v62, %v2789_v62 }
 0x2c4   : > { %v2264_v11 = vmul.f32 %v657_v63, %v657_v63 }
 0x2c6   : > { %v2792_v0 = vpop.f32.mrb[2].mxu1 }
 0x2c7   : > { %v667_v1 = vpop.f32.mrb[3].mxu1  ;;  %v2267_v17 = vmul.f32 %v2792_v0, %v2792_v0 }
 0x2c8   : > { %v2266_v21 = vmul.f32 %v667_v1, %v667_v1 }
 0x2ca   : > { %v2795_v2 = vpop.f32.mrb[4].mxu1 }
 0x2cb   : > { %v677_v3 = vpop.f32.mrb[5].mxu1  ;;  %v3710_v27 = vmul.f32 %v2795_v2, %v2795_v2 }
 0x2cc   : > { %v2268_v31 = vmul.f32 %v677_v3, %v677_v3 }
 0x2ce   : > { %v2798_v4 = vpop.f32.mrb[6].mxu1 }
 0x2cf   : > { %v687_v5 = vpop.f32.mrb[7].mxu1  ;;  %v3717_v37 = vmul.f32 %v2798_v4, %v2798_v4 }
 0x2d0   : > { %v3723_v41 = vmul.f32 %v687_v5, %v687_v5 }
 0x2d2   : > { %v2821_v6 = vpop.f32.mrb[8].mxu1 }
 0x2d3   : > { %v2273_v8 = vmul.f32 %v2821_v6, %v2821_v6  ;;  %v3702_v9 = vmul.f32 %v2821_v6, %v2789_v62  ;;  %v1043_v10 = vpop.f32.mrb[9].mxu1 }
 0x2d4   : > { %v2272_v12 = vmul.f32 %v1043_v10, %v1043_v10  ;;  %v3704_v13 = vmul.f32 %v1043_v10, %v657_v63 }
 0x2d5   : > { %v2353_v14 = vadd.f32 %v2273_v8, %v2265_v7 }
 0x2d6   : > { %v2352_v15 = vadd.f32 %v2272_v12, %v2264_v11  ;;  %v2824_v16 = vpop.f32.mrb[10].mxu1 }
 0x2d7   : > { %v2275_v18 = vmul.f32 %v2824_v16, %v2824_v16  ;;  %v3706_v19 = vmul.f32 %v2824_v16, %v2792_v0  ;;  %v1053_v20 = vpop.f32.mrb[11].mxu1 }
 0x2d8   : > { %v2274_v22 = vmul.f32 %v1053_v20, %v1053_v20  ;;  %v3708_v23 = vmul.f32 %v1053_v20, %v667_v1 }
 0x2d9   : > { %v2355_v24 = vadd.f32 %v2275_v18, %v2267_v17 }
 0x2da   : > { %v2354_v25 = vadd.f32 %v2274_v22, %v2266_v21  ;;  %v2827_v26 = vpop.f32.mrb[12].mxu1 }
 0x2db   : > { %v2277_v28 = vmul.f32 %v2827_v26, %v2827_v26  ;;  %v3712_v29 = vmul.f32 %v2827_v26, %v2795_v2  ;;  %v1063_v30 = vpop.f32.mrb[13].mxu1 }
 0x2dc   : > { %v2276_v32 = vmul.f32 %v1063_v30, %v1063_v30  ;;  %v3714_v33 = vmul.f32 %v1063_v30, %v677_v3 }
 0x2dd   : > { %v2357_v34 = vadd.f32 %v2277_v28, %v3710_v27 }
 0x2de   : > { %v2356_v35 = vadd.f32 %v2276_v32, %v2268_v31  ;;  %v2830_v36 = vpop.f32.mrb[14].mxu1 }
 0x2df   : > { %v3719_v38 = vmul.f32 %v2830_v36, %v2830_v36  ;;  %v3721_v39 = vmul.f32 %v2830_v36, %v2798_v4  ;;  %v1073_v40 = vpop.f32.mrb[15].mxu1 }
 0x2e0   : > { %v3725_v42 = vmul.f32 %v1073_v40, %v1073_v40  ;;  %v3727_v43 = vmul.f32 %v1073_v40, %v687_v5  ;;  %v2361_v5 = vadd.f32 0.0001, %v2353_v14 }
 0x2e1   : > { %v3731_v44 = vadd.f32 %v3719_v38, %v3717_v37 }
 0x2e2   : > { %v3735_v45 = vadd.f32 %v3725_v42, %v3723_v41  ;;  %v2853_v46 = vpop.f32.mrb[16].mxu1 }
 0x2e3   : > { %v2289_v48 = vsub.f32 %v2853_v46, %v2265_v7  ;;  %v1437_v49 = vpop.f32.mrb[17].mxu1 }
 0x2e4   : > { %v2288_v50 = vsub.f32 %v1437_v49, %v2264_v11  ;;  %v2360_v11 = vadd.f32 0.0001, %v2352_v15  ;;  %v2365_v15 = vadd.f32 0.0001, %v2357_v34  ;;  %v2367_v34 = vadd.f32 0.0001, %v3731_v44 }
 0x2e6   : > { %v2856_v51 = vpop.f32.mrb[18].mxu1 }
 0x2e7   : > { %v2291_v52 = vsub.f32 %v2856_v51, %v2267_v17  ;;  %v1447_v53 = vpop.f32.mrb[19].mxu1 }
 0x2e8   : > { %v2290_v54 = vsub.f32 %v1447_v53, %v2266_v21 }
 0x2ea   : > { %v2859_v55 = vpop.f32.mrb[20].mxu1 }
 0x2eb   : > { %v2293_v56 = vsub.f32 %v2859_v55, %v3710_v27  ;;  %v1457_v47 = vpop.f32.mrb[21].mxu1 }
 0x2ec   : > { %v2292_v57 = vsub.f32 %v1457_v47, %v2268_v31  ;;  %v2363_v31 = vadd.f32 0.0001, %v2355_v24  ;;  %v2312_v47 = vmul.f32 2.0, %v3704_v13 }
 0x2ee   : > { %v2862_v58 = vpop.f32.mrb[22].mxu1 }
 0x2ef   : > { %v2295_v59 = vsub.f32 %v2862_v58, %v3717_v37  ;;  %v1467_v60 = vpop.f32.mrb[23].mxu1  ;;  %v2366_v58 = vadd.f32 0.0001, %v3735_v45 }
 0x2f0   : > { %v2294_v61 = vsub.f32 %v1467_v60, %v3723_v41 }
 0x2f2   : > { %v2885_v62 = vpop.f32.mrb[24].mxu1 }
 0x2f3   : > { %v2297_v63 = vsub.f32 %v2885_v62, %v2273_v8  ;;  %v1831_v0 = vpop.f32.mrb[25].mxu1 }
 0x2f4   : > { %v2296_v1 = vsub.f32 %v1831_v0, %v2272_v12  ;;  %v2362_v12 = vadd.f32 0.0001, %v2354_v25  ;;  %v2317_v0 = vmul.f32 2.0, %v3712_v29 }
 0x2f5   : > { %v2369_v2 = vadd.f32 %v2297_v63, %v2289_v48  ;;  %v2314_v63 = vmul.f32 2.0, %v3708_v23 }
 0x2f6   : > { %v2368_v3 = vadd.f32 %v2296_v1, %v2288_v50  ;;  %v2888_v4 = vpop.f32.mrb[26].mxu1 }
 0x2f7   : > { %v2377_v6 = vadd.f32 0.0009, %v2369_v2  ;;  %v2299_v7 = vsub.f32 %v2888_v4, %v2275_v18  ;;  %v1841_v10 = vpop.f32.mrb[27].mxu1 }
 0x2f8   : > { %v2376_v16 = vadd.f32 0.0009, %v2368_v3  ;;  %v2298_v17 = vsub.f32 %v1841_v10, %v2274_v22  ;;  %v2316_v3 = vmul.f32 2.0, %v3714_v33 }
 0x2f9   : > { %v2385_v20 = vmul.f32 %v2377_v6, %v2361_v5  ;;  %v2371_v21 = vadd.f32 %v2299_v7, %v2291_v52  ;;  %v2364_v52 = vadd.f32 0.0001, %v2356_v35 }
 0x2fa   : > { %v2384_v26 = vmul.f32 %v2376_v16, %v2360_v11  ;;  %v2370_v27 = vadd.f32 %v2298_v17, %v2290_v54  ;;  %v2891_v30 = vpop.f32.mrb[28].mxu1 }
 0x2fb   : > { %v2379_v36 = vadd.f32 0.0009, %v2371_v21  ;;  %v2301_v8 = vsub.f32 %v2891_v30, %v2277_v28  ;;  %v1851_v37 = vpop.f32.mrb[29].mxu1  ;;  %3044 = vrcp.f32 %v2385_v20  ;;  %v2322_v20 = vadd.f32 0.0001, %v2314_v63 }
 0x2fc   : > { %v2378_v40 = vadd.f32 0.0009, %v2370_v27  ;;  %v2300_v41 = vsub.f32 %v1851_v37, %v2276_v32  ;;  %3046 = vrcp.f32 %v2384_v26  ;;  %v2313_v32 = vmul.f32 2.0, %v3702_v9 }
 0x2fd   : > { %v2387_v46 = vmul.f32 %v2379_v36, %v2363_v31  ;;  %v2373_v14 = vadd.f32 %v2301_v8, %v2293_v56  ;;  %v2325_v21 = vadd.f32 0.0001, %v2317_v0  ;;  %v2324_v36 = vadd.f32 0.0001, %v2316_v3 }
 0x2fe   : > { %v2386_v48 = vmul.f32 %v2378_v40, %v2362_v12  ;;  %v2372_v18 = vadd.f32 %v2300_v41, %v2292_v57  ;;  %v2894_v49 = vpop.f32.mrb[30].mxu1 }
 0x2ff   : > { %v2381_v50 = vadd.f32 0.0009, %v2373_v14  ;;  %v2303_v22 = vsub.f32 %v2894_v49, %v3719_v38  ;;  %v1861_v51 = vpop.f32.mrb[31].mxu1  ;;  %3048 = vrcp.f32 %v2387_v46  ;;  %v2319_v49 = vmul.f32 2.0, %v3721_v39 }
 0x300   : > { %v2380_v53 = vadd.f32 0.0009, %v2372_v18  ;;  %v2302_v24 = vsub.f32 %v1861_v51, %v3725_v42  ;;  %3050 = vrcp.f32 %v2386_v48 }
 0x301   : > { %v2389_v28 = vmul.f32 %v2381_v50, %v2365_v15  ;;  %v2375_v25 = vadd.f32 %v2303_v22, %v2295_v59  ;;  %v2315_v59 = vmul.f32 2.0, %v3706_v19 }
 0x302   : > { %v2388_v54 = vmul.f32 %v2380_v53, %v2364_v52  ;;  %v2374_v55 = vadd.f32 %v2302_v24, %v2294_v61  ;;  %v2917_v56 = vpop.f32.mrb[32].mxu1 }
 0x303   : > { %v2383_v57 = vadd.f32 0.0009, %v2375_v25  ;;  %v2305_v38 = vsub.f32 %v2917_v56, %v3702_v9  ;;  %v2225_v35 = vpop.f32.mrb[33].mxu1  ;;  %v2321_v9 = vadd.f32 0.0001, %v2313_v32  ;;  %3052 = vrcp.f32 %v2389_v28 }
 0x304   : > { %v2382_v42 = vadd.f32 0.0009, %v2374_v55  ;;  %v2304_v60 = vsub.f32 %v2225_v35, %v3704_v13  ;;  %v2320_v13 = vadd.f32 0.0001, %v2312_v47  ;;  %v2323_v10 = vadd.f32 0.0001, %v2315_v59 }
 0x305   : > { %v2391_v62 = vmul.f32 %v2383_v57, %v2367_v34  ;;  %v2329_v61 = vmul.f32 2.0, %v2305_v38  ;;  %3054 = vrcp.f32 %v2388_v54  ;;  %v3045_v17 = vpop.eup %3044  ;;  %v2318_v25 = vmul.f32 2.0, %v3727_v43 }
 0x306   : > { %v2390_v44 = vmul.f32 %v2382_v42, %v2366_v58  ;;  %v2328_v1 = vmul.f32 2.0, %v2304_v60  ;;  %v2920_v2 = vpop.f32.mrb[34].mxu1  ;;  %v3047_v31 = vpop.eup %3046  ;;  %v2327_v42 = vadd.f32 0.0001, %v2319_v49 }
 0x307   : > { %v2337_v45 = vadd.f32 0.0009, %v2329_v61  ;;  %v2307_v4 = vsub.f32 %v2920_v2, %v3706_v19  ;;  %v2235_v5 = vpop.f32.mrb[35].mxu1  ;;  %3056 = vrcp.f32 %v2391_v62 }
 0x308   : > { %v2336_v6 = vadd.f32 0.0009, %v2328_v1  ;;  %v2306_v7 = vsub.f32 %v2235_v5, %v3708_v23  ;;  %3058 = vrcp.f32 %v2390_v44 }
 0x309   : > { %v2345_v11 = vmul.f32 %v2337_v45, %v2321_v9  ;;  %v2331_v16 = vmul.f32 2.0, %v2307_v4  ;;  %v3049_v18 = vpop.eup %3048 }
 0x30a   : > { %v2344_v26 = vmul.f32 %v2336_v6, %v2320_v13  ;;  %v2330_v27 = vmul.f32 2.0, %v2306_v7  ;;  %v2923_v30 = vpop.f32.mrb[36].mxu1 }
 0x30b   : > { %v2395_v8 = vmul.f32 %v3045_v17, %v2345_v11  ;;  %v2339_v19 = vadd.f32 0.0009, %v2331_v16  ;;  %v2309_v37 = vsub.f32 %v2923_v30, %v3712_v29  ;;  %v2245_v12 = vpop.f32.mrb[37].mxu1  ;;  %v3051_v29 = vpop.eup %3050 }
 0x30c   : > { %v2393_v40 = vmul.f32 %v3047_v31, %v2344_v26  ;;  %v2338_v23 = vadd.f32 0.0009, %v2330_v27  ;;  %v2308_v41 = vsub.f32 %v2245_v12, %v3714_v33 }
 0x30d   : > { %v2409_v46 = vsel %vm307_vm0, %v2395_v8, 0.0  ;;  %v2347_v14 = vmul.f32 %v2339_v19, %v2323_v10  ;;  %v2333_v48 = vmul.f32 2.0, %v2309_v37  ;;  %v3053_v34 = vpop.eup %3052 }
 0x30e   : > { %v2408_v15 = vsel %vm307_vm0, %v2393_v40, 0.0  ;;  %v2346_v50 = vmul.f32 %v2338_v23, %v2322_v20  ;;  %v2332_v22 = vmul.f32 2.0, %v2308_v41  ;;  %v2926_v51 = vpop.f32.mrb[38].mxu1 }
 0x30f   : > { %v2410_v52 = vadd.f32 %v2409_v46, %v2408_v15  ;;  %v2399_v53 = vmul.f32 %v3049_v18, %v2347_v14  ;;  %v2341_v24 = vadd.f32 0.0009, %v2333_v48  ;;  %v2311_v28 = vsub.f32 %v2926_v51, %v3721_v39  ;;  %v2255_v33 = vpop.f32.mrb[39].mxu1  ;;  %v3055_v58 = vpop.eup %3054 }
 0x310   : > { %v2397_v32 = vmul.f32 %v3051_v29, %v2346_v50  ;;  %v2340_v54 = vadd.f32 0.0009, %v2332_v22  ;;  %v2310_v55 = vsub.f32 %v2255_v33, %v3727_v43  ;;  %v2326_v39 = vadd.f32 0.0001, %v2318_v25 }
 0x311   : > { %v2349_v56 = vmul.f32 %v2341_v24, %v2325_v21  ;;  %v2335_v47 = vmul.f32 2.0, %v2311_v28  ;;  %v2413_v61 = vsel %vm307_vm0, %v2399_v53, 0.0  ;;  %v3057_v43 = vpop.eup %3056 }
 0x312   : > { %v2411_v57 = vsel %vm307_vm0, %v2397_v32, 0.0  ;;  %v2348_v38 = vmul.f32 %v2340_v54, %v2324_v36  ;;  %v2334_v35 = vmul.f32 2.0, %v2310_v55  ;;  %v3059_v3 = vpop.eup %3058 }
 0x313   : > { %v2412_v60 = vadd.f32 %v2411_v57, %v2410_v52  ;;  %v2403_v59 = vmul.f32 %v3053_v34, %v2349_v56  ;;  %v2343_v62 = vadd.f32 0.0009, %v2335_v47 }
 0x314   : > { %v2401_v63 = vmul.f32 %v3055_v58, %v2348_v38  ;;  %v2342_v0 = vadd.f32 0.0009, %v2334_v35 }
 0x315   : > { %v2351_v44 = vmul.f32 %v2343_v62, %v2327_v42  ;;  %v2414_v1 = vadd.f32 %v2413_v61, %v2412_v60  ;;  %v2417_v13 = vsel %vm307_vm0, %v2403_v59, 0.0 }
 0x316   : > { %v2415_v2 = vsel %vm307_vm0, %v2401_v63, 0.0  ;;  %v2350_v9 = vmul.f32 %v2342_v0, %v2326_v39 }
 0x317   : > { %v2407_v45 = vmul.f32 %v3057_v43, %v2351_v44  ;;  %v2416_v4 = vadd.f32 %v2415_v2, %v2414_v1 }
 0x318   : > { %v2405_v5 = vmul.f32 %v3059_v3, %v2350_v9 }
 0x319   : > { %v2418_v6 = vadd.f32 %v2417_v13, %v2416_v4  ;;  %v2421_v11 = vsel %vm307_vm0, %v2407_v45, 0.0 }
 0x31a   : > { %v2419_v7 = vsel %vm307_vm0, %v2405_v5, 0.0 }
 0x31b   : > { %v2420_v10 = vadd.f32 %v2419_v7, %v2418_v6 }
 0x31d   : > { %v2422_v16 = vadd.f32 %v2421_v11, %v2420_v10 }
 0x31f   : > { %2423 = vadd.xlane.f32.xlu0 %v2422_v16 }
 0x3ac   : > { %v2424_v17 = vpop.xlane.xlu0 %2423 }
 0x3ad   : > { %v2425_v20 = vrot.slane %v2424_v17, 4 }
 0x3af   : > { %v2426_v21 = vadd.f32 %v2425_v20, %v2424_v17 }
 0x3b1   : > { %v2427_v26 = vrot.slane %v2426_v21, 2 }
 0x3b3   : > { %v2428_v27 = vadd.f32 %v2427_v26, %v2426_v21 }
 0x3b5   : > { %v2429_v30 = vrot.slane %v2428_v27, 1 }
 0x3b7   : > { %v2430_v31 = vadd.f32 %v2429_v30, %v2428_v27 }
 0x3b9   : > { %2967 = vpush %v2430_v31 }
 0x3ea   : > { %s2968_s8 = spop %2967 }
 0x3eb   : > { %v2432_v36 = vstv %s2968_s8 }
 0x3ec   : > { %2433 = vst [vmem:[%s286_s27] sm:$0xff] %v2432_v36 }
 0x3ed   : > { %3189 = shalt.err (!%p3186_p7)
}
 0x3ee   : > { %s3190_s7 = scalar_lea.hbm %s3775_s30, 128  ;;  %s3194_s25 = scalar_lea.hbm %s3821_s4, 256 }
 0x3ef   : > { %p3191_p9 = scmp.ne.s32.totalorder %s3775_s30, %s3190_s7  ;;  %p3195_p11 = scmp.lt.u32.totalorder %s3775_s30, %s3821_s4 }
 0x3f0   : > { %p3196_p2 = scmp.lt.u32.totalorder %s3194_s25, %s3190_s7  ;;  %p3198_p1 = scmp.lt.u32.totalorder %s3190_s7, %s3775_s30 }
 0x3f1   : > { %p3192_p0 = pnand %p3191_p9, %p3845_p13 }
 0x3f2   : > { %p3197_p12 = por %p3196_p2, %p3195_p11 }
 0x3f3   : > { %p3193_p8 = pneg %p3192_p0 }
 0x3f4   : > { %p3199_p6 = por %p3198_p1, %p3197_p12 }
 0x3f6   : > { %p3200_p10 = pnand %p3199_p6, %p3193_p8 }
 0x3f8   : > { %3203 = shalt.err (!%p3200_p10)
}
 0x3f9   : > { %2981 = dma.vmem_to_hbm [thread:$0]  (%p3845_p13), %s3770_s10, 128, %s3775_s30, %s2435_s6  }
 0x3fa PF: > { %s2460_s21 = sand.u32 1, %s3242_s15   ;;  %p3846_p4 = scmp.ne.s32.totalorder %s3831_s22, 0 }
 0x3fb   : > { %p3847_p5 = scmp.ge.s32.totalorder %s3254_s18, 2  ;;  %s2461_s27 = scalar_lea.sflag [#allocation4], %s2460_s21 }
 0x3fd   : > { %p2998_p3 = pnand %p3847_p5, %p3846_p4 }
 0x3ff   : > { %3237 = dma.done.wait (!%p2998_p3), %s2461_s27, 128  }
 0x400   : > { %3239 = vsyncadd (!%p2998_p3), %s2461_s27, 4294967168  ;;  %p21_p7 = scmp.ge.s32.totalorder %s3404_s26, 4   ;;  %s3848_s15 = smov %s3246_s16 }
 0x401   : > { %s3849_s16 = smov %s3250_s17  ;;  %s3850_s17 = smov %s3420_s14 }
 0x402   : > { %s3851_s18 = smov %s3404_s26  ;;  %23 = sbr.rel (!%p21_p7) target bundleno = 10 (0xa), region = 102 }
 0x409   :  { %2466 = vsyncpa [#allocation3], 1 }
 0x40a   :  { %2468 = vsyncpa [#allocation3 + $0x1], 1 }
 0x40b   :  { %2469 = vsyncpa [#allocation6], 1 }
 0x40c   :  { %2471 = vsyncpa [#allocation6 + $0x1], 1 }
 0x40d   :  { %2472 = vsyncpa [#allocation9], 1 }
 0x40e   :  { %2473 = vsyncpa [#allocation4], 1 }
 0x40f   :  { %2475 = vsyncpa [#allocation4 + $0x1], 1 }

</bundles_post_ra>
